<compile_context>
chip_gen: v7x
topology: tpu7x:2x2x1
jax: 0.10.0
libtpu: 0.0.40
codegen_flags: <defaults>
</compile_context>

<pallas_src>
import numpy as np
import jax
import jax.numpy as jnp
from jax.experimental import pallas as pl
from jax.experimental.pallas import tpu as pltpu


def _affine_grid_kernel(theta_ref, basis_ref, out_ref):
    # theta_ref: (TB, 8)    f32  [t0..t5, 0, 0]
    # basis_ref: (8, THW)   f32  parity-masked gx/gy/1 rows (resident in VMEM)
    # out_ref:   (TB, THW)  f32  flat (h, w, c) interleave of the final grid
    out_ref[...] = jnp.dot(
        theta_ref[...],
        basis_ref[...],
        preferred_element_type=jnp.float32,
        precision=jax.lax.Precision.HIGHEST,
    )


def _make_basis(out_h, out_w, hw2_pad):
    """Basis(8, hw2_pad): out[b, 2*(h*W+w)+c] = sum_k theta8[b,k]*Basis[k, ...]."""
    H, W = out_h, out_w
    xs = np.linspace(-1.0, 1.0, W).astype(np.float32)           # (W,)
    ys = np.linspace(-1.0, 1.0, H).astype(np.float32)           # (H,)
    gx = np.broadcast_to(xs[None, :], (H, W)).reshape(-1)       # (H*W,) row-major
    gy = np.broadcast_to(ys[:, None], (H, W)).reshape(-1)
    ones = np.ones(H * W, dtype=np.float32)

    basis = np.zeros((8, hw2_pad), dtype=np.float32)
    hw2 = 2 * H * W
    # even lanes (c == 0) -> Xp uses t0, t1, t2
    basis[0, 0:hw2:2] = gx
    basis[1, 0:hw2:2] = gy
    basis[2, 0:hw2:2] = ones
    # odd lanes (c == 1) -> Yp uses t3, t4, t5
    basis[3, 1:hw2:2] = gx
    basis[4, 1:hw2:2] = gy
    basis[5, 1:hw2:2] = ones
    return jnp.asarray(basis)


def _pick_tiles(b, hw2, *, target_tile_bytes=8 << 20, max_tb=64):
    """Choose (tb, b_pad, t_hw2, hw2_pad, n_b, n_hw)."""
    # --- batch axis: pad to sublane multiple of 8, divisor-friendly tb ---
    b_pad = max(8, ((b + 7) // 8) * 8)
    m = b_pad // 8
    d_b = 1
    for d in range(1, m + 1):
        if m % d == 0 and 8 * d <= max_tb:
            d_b = d
    tb = 8 * d_b
    n_b = b_pad // tb

    # --- lane axis: pad to multiple of 128, pick divisor-friendly tile ---
    hw2_pad = ((hw2 + 127) // 128) * 128
    units = hw2_pad // 128
    per_unit_bytes = tb * 128 * 4
    max_units = max(1, target_tile_bytes // per_unit_bytes)
    d_hw = 1
    for d in range(1, units + 1):
        if units % d == 0 and d <= max_units:
            d_hw = d
    # Guarantee >=2 grid steps when possible (v7x megacore + pipelining).
    if n_b * (units // d_hw) < 2 and units > 1:
        best = 1
        for d in range(1, units):           # proper divisors only
            if units % d == 0 and d <= max_units:
                best = d
        d_hw = best
    t_hw2 = d_hw * 128
    n_hw = units // d_hw
    return tb, b_pad, t_hw2, hw2_pad, n_b, n_hw


def affine_grid_gen_v2(theta, out_h=240, out_w=240):
    """JAX/Pallas equivalent of AffineGridGenV2.forward.

    theta: (b, 6) (or reshapeable to it). Returns (b, out_h, out_w, 2) f32.
    """
    b = theta.shape[0]
    theta = jnp.reshape(theta, (b, 6)).astype(jnp.float32)

    hw2 = 2 * out_h * out_w
    tb, b_pad, t_hw2, hw2_pad, n_b, n_hw = _pick_tiles(b, hw2)

    # theta padded to (b_pad, 8); extra columns multiply zero basis rows.
    theta8 = jnp.zeros((b_pad, 8), jnp.float32).at[:b, :6].set(theta)

    basis = _make_basis(out_h, out_w, hw2_pad)   # (8, hw2_pad), trace-time const

    out_flat = pl.pallas_call(
        _affine_grid_kernel,
        out_shape=jax.ShapeDtypeStruct((b_pad, hw2_pad), jnp.float32),
        grid_spec=pltpu.PrefetchScalarGridSpec(
            num_scalar_prefetch=0,
            # hw tiles outer, batch tiles inner -> basis block is resident
            # (not re-DMAed) across the whole inner batch loop.
            grid=(n_hw, n_b),
            in_specs=[
                pl.BlockSpec((tb, 8), lambda hwi, bi: (bi, 0)),
                pl.BlockSpec((8, t_hw2), lambda hwi, bi: (0, hwi)),
            ],
            out_specs=pl.BlockSpec((tb, t_hw2), lambda hwi, bi: (bi, hwi)),
        ),
        compiler_params=pltpu.CompilerParams(
            dimension_semantics=("parallel", "parallel"),
            vmem_limit_bytes=48 * 1024 * 1024,
        ),
    )(theta8, basis)

    if b_pad != b or hw2_pad != hw2:
        out_flat = out_flat[:b, :hw2]
    # Free row-major reshape: (b, 2*H*W) -> (b, H, W, 2).
    return out_flat.reshape(b, out_h, out_w, 2)


def _reference(theta, out_h, out_w):
    b = theta.shape[0]
    theta = jnp.reshape(theta, (b, 6)).astype(jnp.float32)
    xs = jnp.linspace(-1.0, 1.0, out_w, dtype=jnp.float32)
    ys = jnp.linspace(-1.0, 1.0, out_h, dtype=jnp.float32)
    gx = jnp.broadcast_to(xs[None, :], (out_h, out_w))[None]   # (1, H, W)
    gy = jnp.broadcast_to(ys[:, None], (out_h, out_w))[None]
    t = theta[:, None, None, :]                                # (b, 1, 1, 6)
    xp = gx * t[..., 0] + gy * t[..., 1] + t[..., 2]
    yp = gx * t[..., 3] + gy * t[..., 4] + t[..., 5]
    return jnp.stack([xp, yp], axis=-1)                        # (b, H, W, 2)


if __name__ == "__main__":
    key = jax.random.PRNGKey(0)
    b, out_h, out_w = 2, 16, 16
    theta = jax.random.normal(key, (b, 6), dtype=jnp.float32)

    out = affine_grid_gen_v2(theta, out_h=out_h, out_w=out_w)
    out = jax.block_until_ready(out)

    ref = _reference(theta, out_h, out_w)
    assert out.shape == (b, out_h, out_w, 2), out.shape
    assert jnp.allclose(out, ref, atol=1e-5), "mismatch vs reference"

    print("KERNEL_OK")
</pallas_src>

<mosaic_0001>
module attributes {stable_mosaic.version = 11 : i64} {
  func.func @_affine_grid_kernel(%arg0: i32, %arg1: i32, %arg2: memref<8x8xf32, #tpu.memory_space<vmem>>, %arg3: memref<8x256xf32, #tpu.memory_space<vmem>>, %arg4: memref<8x256xf32, #tpu.memory_space<vmem>>) attributes {dimension_semantics = [#tpu.dimension_semantics<parallel>, #tpu.dimension_semantics<parallel>], iteration_bounds = array<i64: 2, 1>, scalar_prefetch = 0 : i64, scratch_operands = 0 : i64, tpu.core_type = #tpu.core_type<tc>, window_params = [{transform_indices = @transform_0, window_bounds = array<i64: 8, 8>}, {transform_indices = @transform_1, window_bounds = array<i64: 8, 256>}, {transform_indices = @transform_2, window_bounds = array<i64: 8, 256>}]} {
    %c0 = arith.constant 0 : index
    %c0_0 = arith.constant 0 : index
    %0 = vector.load %arg2[%c0, %c0_0] : memref<8x8xf32, #tpu.memory_space<vmem>>, vector<8x8xf32>
    %c0_1 = arith.constant 0 : index
    %c0_2 = arith.constant 0 : index
    %1 = vector.load %arg3[%c0_1, %c0_2] : memref<8x256xf32, #tpu.memory_space<vmem>>, vector<8x256xf32>
    %cst = arith.constant dense<0.000000e+00> : vector<8x256xf32>
    %2 = tpu.matmul %0, %1, %cst {dimension_numbers = #tpu.dot_dimension_numbers<[1], [0], [0], [1], [0, 0, 1, 1], [], []>, precision = #tpu.contract_precision<fp32>} : vector<8x8xf32>, vector<8x256xf32>, vector<8x256xf32> -> vector<8x256xf32>
    %c0_3 = arith.constant 0 : index
    %c0_4 = arith.constant 0 : index
    %3 = vector.load %arg4[%c0_3, %c0_4] : memref<8x256xf32, #tpu.memory_space<vmem>>, vector<8x256xf32>
    tpu.vector_store %arg4[%c0_3, %c0_4], %2 {strides = array<i32>} : memref<8x256xf32, #tpu.memory_space<vmem>>, vector<8x256xf32>,
    return
  }
  func.func @transform_0(%arg0: i32, %arg1: i32) -> (i32, i32) {
    %c0_i32 = arith.constant 0 : i32
    %c0_i32_0 = arith.constant 0 : i32
    return %arg1, %c0_i32 : i32, i32
  }
  func.func @transform_1(%arg0: i32, %arg1: i32) -> (i32, i32) {
    %c0_i32 = arith.constant 0 : i32
    %c0_i32_0 = arith.constant 0 : i32
    return %c0_i32, %arg0 : i32, i32
  }
  func.func @transform_2(%arg0: i32, %arg1: i32) -> (i32, i32) {
    %c0_i32 = arith.constant 0 : i32
    return %arg1, %arg0 : i32, i32
  }
}

</mosaic_0001>

<bundles_post_ra>
// kernel: tpu_custom_call.1
= control target key start
LH: loop header
LB: loop body
LE: loop exit
PB: predicated region body
PF: predicated region fallthrough
CT: control target
= control target key end

     0   :  { %7 = vsyncpa [#allocation3], 0  ;;  %s1270_s0 = inlined_call_operand.hbm [shape: f32[8,8], index: 0, kind: input, shape index: {}]   ;;  %s1271_s1 = inlined_call_operand.hbm [shape: f32[8,512], index: 1, kind: input, shape index: {}]   ;;  %s1272_s2 = inlined_call_operand.hbm [shape: f32[8,512], index: 2, kind: output, shape index: {}]  }
   0x1   :  { %8 = vsyncpa [#allocation6], 0 }
   0x2   :  { %10 = vsyncpa [#allocation6 + $0x1], 0 }
   0x3   :  { %11 = vsyncpa [#allocation4], 0 }
   0x4   :  { %13 = vsyncpa [#allocation4 + $0x1], 0  ;;  %s1050_s9 = smov 0   ;;  %s1052_s10 = smov 0  }
   0x5   :  { %s1054_s11 = smov 0   ;;  %s1056_s12 = smov 0  }
   0x6   :  { %s1058_s13 = smov 0   ;;  %s1060_s14 = smov 0  }
   0x7 LB: > { %s782_s15 = sadd.s32 4294967295, %s1029_s14   ;;  %s783_s16 = sadd.s32 4294967294, %s1029_s14   ;;  %s1029_s14 = sphi %s1060_s14, %s19_s14   ;;  %s1025_s13 = sphi %s1058_s13, %s1297_s13   ;;  %s1021_s12 = sphi %s1056_s12, %s1296_s12   ;;  %s1017_s11 = sphi %s1054_s11, %s1295_s11   ;;  %s1013_s10 = sphi %s1052_s10, %s1294_s10   ;;  %s1009_s9 = sphi %s1050_s9, %s1293_s9  }
   0x8   : > { %p77_p0 = scmp.ne.s32.totalorder %s1013_s10, %s1009_s9  ;;  %p1084_p1 = scmp.eq.s32.totalorder %s782_s15, 0 }
   0x9   : > { %p1088_p2 = scmp.eq.s32.totalorder %s782_s15, 1  ;;  %p109_p3 = scmp.eq.s32.totalorder %s783_s16, 1 }
   0xa   : > { %s1277_s17 = scalar_select %p1084_p1, 1, 0 }
   0xb   : > { %s1278_s18 = scalar_select %p1088_p2, 1, 0 }
   0xc   : > { %p1094_p4 = por %p1084_p1, %p77_p0  ;;  %p784_p5 = scmp.ge.s32.totalorder %s1029_s14, 1 }
   0xd   : > { %p1099_p6 = por %p109_p3, %p77_p0  ;;  %p116_p7 = scmp.lt.s32.totalorder %s1029_s14, 3 }
   0xe   : > { %s1279_s19 = scalar_select %p1094_p4, 1, 0 }
   0xf   : > { %s1280_s20 = scalar_select %p1099_p6, 1, 0 }
  0x10   : > { %p1104_p8 = pnand %p784_p5, %p116_p7  ;;  %s1031_s22 = smov [#allocation2]  }
  0x11   : > { %s131_s23 = sshll.u32 %s1031_s22, 4  ;;  %s31_s25 = sadd.s32 1, %s1025_s13  ;;  %s132_s23 = int_to_ptr.vmem [resolvable:$true] %s131_s23 }
  0x12   : > { %s1281_s21 = scalar_select %p1104_p8, 1, 0 }
  0x13   : > { %p819_p10 = pneg %p1104_p8  ;;  %s64_s26 = sadd.s32 1, %s1017_s11 }
  0x14   : > { %p1119_p12 = scmp.ge.s32.totalorder %s31_s25, 2  ;;  %s885_s30 = scalar_lea.hbm %s1270_s0, 128 }
  0x15   : > { %p1113_p11 = pnand %p819_p10, %p1084_p1  ;;  %p886_p13 = scmp.ne.s32.totalorder %s1270_s0, %s885_s30 }
  0x16   : > { %s1283_s27 = scalar_select %p1119_p12, 1, 0 }
  0x17   : > { %p887_p0 = pneg %p1113_p11  ;;  %p892_p7 = scmp.lt.u32.totalorder %s885_s30, %s1270_s0 }
  0x19   : > { %p888_p3 = pnand %p887_p0, %p886_p13 }
  0x1b   : > { %p889_p5 = pneg %p888_p3 }
  0x1d   : > { %p894_p10 = pnand %p892_p7, %p889_p5 }
  0x1f   : > { %897 = shalt.err (!%p894_p10)
}
  0x20   : > { %s898_s7 = scalar_lea.vmem %s132_s23, 128  ;;  %p906_p1 = scmp.lt.s32.totalorder %s132_s23, %s132_s23 }
  0x21   : > { %p899_p9 = scmp.ne.s32.totalorder %s132_s23, %s898_s7  ;;  %p907_p8 = scmp.lt.s32.totalorder %s898_s7, %s898_s7 }
  0x23   : > { %p901_p6 = pnand %p899_p9, %p887_p0  ;;  %p908_p2 = por %p907_p8, %p906_p1 }
  0x25   : > { %p902_p4 = pneg %p901_p6 }
  0x27   : > { %p909_p12 = pnand %p908_p2, %p902_p4 }
  0x29   : > { %912 = shalt.err (!%p909_p12)
}
  0x2a   : > { %822 = dma.hbm_to_vmem [thread:$0]  (!%p1113_p11), %s1270_s0, 128, %s132_s23, [#allocation3]  }
  0x2b   : > { %p1284_p1 = scmp.ne.s32.totalorder %s1283_s27, 0  ;;  %p71_p2 = scmp.ne.s32.totalorder %s1017_s11, %s1013_s10 }
  0x2c   : > { %p72_p4 = scmp.eq.s32.totalorder %s1029_s14, 0  ;;  %p832_p6 = scmp.lt.s32.totalorder %s1029_s14, 2 }
  0x2d   : > { %s1299_s25 = smov (%p1284_p1, %s31_s25), 0  ;;  %p1285_p12 = scmp.ne.s32.totalorder %s1278_s18, 0 }
  0x2e   : > { %s61_s16 = ssub.s32 %s1025_s13, %s1299_s25  ;;  %p73_p9 = por %p72_p4, %p71_p2 }
  0x2f   : > { %p62_p8 = scmp.eq.s32.totalorder %s61_s16, 0  ;;  %p1151_p13 = por %p1285_p12, %p71_p2 }
  0x30   : > { %s142_s24 = sand.u32 1, %s1017_s11   ;;  %s799_s27 = sshll.u32 %s1025_s13, 8 }
  0x31   : > { %s1159_s28 = scalar_select %p62_p8, %s1017_s11, %s64_s26  }
  0x32   : > { %s787_s23 = sshll.u32 %s142_s24, 4  ;;  %s1165_s3 = scalar_lea.hbm %s1271_s1, %s799_s27 }
  0x33   : > { %s146_s18 = scalar_lea.vmem [#allocation5], %s787_s23  ;;  %p1169_p11 = pnand %p832_p6, %p73_p9 }
  0x34   : > { %s154_s4 = sshll.u32 %s146_s18, 4  ;;  %s143_s26 = scalar_lea.sflag [#allocation6], %s142_s24  ;;  %s1167_s4 = int_to_ptr.vmem [resolvable:$true] %s154_s4 }
  0x35   : > { %s913_s6 = scalar_lea.hbm %s1165_s3, 256  ;;  %p915_p3 = pneg %p1169_p11 }
  0x36   : > { %p914_p0 = scmp.ne.s32.totalorder %s1165_s3, %s913_s6  ;;  %s918_s15 = scalar_lea.hbm %s1271_s1, 512 }
  0x37   : > { %p919_p10 = scmp.lt.u32.totalorder %s1165_s3, %s1271_s1  ;;  %p920_p1 = scmp.lt.u32.totalorder %s918_s15, %s913_s6 }
  0x38   : > { %p916_p5 = pnand %p915_p3, %p914_p0  ;;  %p922_p4 = scmp.lt.u32.totalorder %s913_s6, %s1165_s3 }
  0x39   : > { %p921_p2 = por %p920_p1, %p919_p10 }
  0x3a   : > { %p917_p7 = pneg %p916_p5 }
  0x3b   : > { %p923_p6 = por %p922_p4, %p921_p2 }
  0x3d   : > { %p924_p8 = pnand %p923_p6, %p917_p7 }
  0x3f   : > { %927 = shalt.err (!%p924_p8)
}
  0x40   : > { %s928_s24 = scalar_lea.vmem %s1167_s4, 256  ;;  %s1032_s27 = smov [#allocation5]  }
  0x41   : > { %p929_p9 = scmp.ne.s32.totalorder %s1167_s4, %s928_s24  ;;  %s933_s29 = sshll.u32 %s1032_s27, 4  ;;  %s934_s29 = int_to_ptr.vmem [resolvable:$false] %s933_s29 }
  0x42   : > { %s935_s30 = scalar_lea.vmem %s934_s29, 512  ;;  %p936_p5 = scmp.lt.s32.totalorder %s1167_s4, %s934_s29 }
  0x43   : > { %p931_p12 = pnand %p929_p9, %p915_p3  ;;  %p937_p10 = scmp.lt.s32.totalorder %s935_s30, %s928_s24 }
  0x45   : > { %p932_p0 = pneg %p931_p12  ;;  %p938_p1 = por %p937_p10, %p936_p5 }
  0x47   : > { %p939_p2 = pnand %p938_p1, %p932_p0 }
  0x49   : > { %942 = shalt.err (!%p939_p2)
}
  0x4a   : > { %826 = dma.hbm_to_vmem [thread:$0]  (!%p1169_p11), %s1165_s3, 256, %s1167_s4, %s143_s26  }
  0x4b   : > { %p1288_p7 = scmp.ne.s32.totalorder %s1281_s21, 0 }
  0x4c   : > { %p1289_p3 = scmp.ne.s32.totalorder (!%p1288_p7), %s1277_s17, 0 }
  0x4d   : > { %163 = sbr.rel (%p1288_p7) target bundleno = 347 (0x15b), region = 28 }
  0x54   : > { %996 = dma.done.wait (%p1289_p3), [#allocation3], 128  }
  0x55   : > { %998 = vsyncadd (%p1289_p3), [#allocation3], 4294967168  ;;  %s1205_s18 = sand.u32 1, %s1013_s10   ;;  %p1290_p11 = scmp.ne.s32.totalorder %s1279_s19, 0 }
  0x56   : > { %s792_s5 = sshll.u32 %s1205_s18, 4  ;;  %s170_s6 = scalar_lea.sflag [#allocation6], %s1205_s18 }
  0x57   : > { %s173_s3 = scalar_lea.vmem [#allocation5], %s792_s5 }
  0x58   : > { %1000 = dma.done.wait (%p1290_p11), %s170_s6, 256  }
  0x59   : > { %1002 = vsyncadd (%p1290_p11), %s170_s6, 4294967040  ;;  %v1033_v0 = vmov 0.0   ;;  %vm199_vm0 = vcmask 64512   ;;  %v198_v1 = vld [vmem:[%s173_s3 + $0x8] sm:$0xff]  ;;  %v197_v2 = vld [vmem:[%s173_s3] sm:$0xff]  ;;  %s800_s17 = sshll.u32 %s1021_s12, 8 }
  0x5a   : > { %506 = vmatprep.mubr.f32.mxu0 %v1033_v0  ;;  %269 = vmatprep.mubr.f32.mxu1 %v1033_v0  ;;  %v196_v3 = vld [vmem:[#allocation2] sm:$0xff]  ;;  %v203_v4 = vand.u32 4294901760, %v198_v1  ;;  %v205_v5 = vand.u32 4294901760, %v197_v2  ;;  %s193_s19 = scalar_lea.vmem [#allocation7], %s792_s5  ;;  %s1221_s7 = scalar_lea.hbm %s1272_s2, %s800_s17 }
  0x5b   : > { %v201_v6 = vsel %vm199_vm0, %v196_v3, 0  ;;  %s687_s21 = sshll.u32 %s193_s19, 4  ;;  %s671_s12 = scalar_lea.sflag [#allocation4], %s1205_s18  ;;  %s1223_s21 = int_to_ptr.vmem [resolvable:$true] %s687_s21 }
  0x5c   : > { %v270_v7 = vand.u32 4294901760, %v201_v6  ;;  %441 = vmatprep.subr.mxu0 %v203_v4  ;;  %v288_v8 = vsub.f32 %v197_v2, %v205_v5  ;;  %204 = vmatprep.subr.mxu1 %v203_v4  ;;  %v282_v9 = vsub.f32 %v198_v1, %v203_v4  ;;  %s943_s8 = scalar_lea.vmem %s1223_s21, 256  ;;  %s1034_s15 = smov [#allocation7]  }
  0x5d   : > { %443 = vmatpush1.msra.mxu0 %v205_v5  ;;  %206 = vmatpush1.msra.mxu1 %v205_v5  ;;  %p944_p4 = scmp.ne.s32.totalorder %s1223_s21, %s943_s8  ;;  %s947_s16 = sshll.u32 %s1034_s15, 4  ;;  %s948_s16 = int_to_ptr.vmem [resolvable:$false] %s947_s16 }
  0x5e   : > { %v271_v10 = vsub.f32 %v201_v6, %v270_v7  ;;  %v283_v11 = vand.u32 4294901760, %v282_v9  ;;  %v289_v12 = vand.u32 4294901760, %v288_v8  ;;  %s949_s23 = scalar_lea.vmem %s948_s16, 512  ;;  %p950_p9 = scmp.lt.s32.totalorder %s1223_s21, %s948_s16 }
  0x5f   : > { %p945_p6 = pnand %p944_p4, %p1151_p13  ;;  %p951_p12 = scmp.lt.s32.totalorder %s949_s23, %s943_s8 }
  0x60   : > { %v272_v13 = vand.u32 4294901760, %v271_v10  ;;  %v284_v14 = vsub.f32 %v282_v9, %v283_v11  ;;  %519 = vmatprep.subr.mxu0 %v283_v11  ;;  %v290_v15 = vsub.f32 %v288_v8, %v289_v12 }
  0x61   : > { %p946_p8 = pneg %p945_p6  ;;  %p952_p0 = por %p951_p12, %p950_p9 }
  0x62   : > { %510 = vmatmul.mubr.f32.vlgmr.msra.gmra.mrb[0].mxu0 %v272_v13  ;;  %v273_v16 = vsub.f32 %v271_v10, %v272_v13  ;;  %v285_v17 = vand.u32 4294901760, %v284_v14  ;;  %v291_v18 = vand.u32 4294901760, %v290_v15 }
  0x63   : > { %523 = vmatpush1.msra.mxu0 %v289_v12  ;;  %586 = vmatprep.mubr.f32.mxu0 %v1033_v0  ;;  %p953_p5 = pnand %p952_p0, %p946_p8 }
  0x64   : > { %v274_v19 = vand.u32 4294901760, %v273_v16  ;;  %595 = vmatprep.subr.mxu0 %v203_v4  ;;  %286 = vmatprep.subr.mxu1 %v285_v17 }
  0x66   : > { %275 = vmatmul.mubr.f32.vlgmr.msra.gmra.mrb[0].mxu1 %v274_v19 }
  0x67   : > { %292 = vmatpush1.msra.mxu1 %v291_v18  ;;  %355 = vmatprep.mubr.f32.mxu1 %v1033_v0 }
  0x68   : > { %365 = vmatprep.subr.mxu1 %v282_v9 }
  0x6a   : > { %588 = vmatmul.mubr.f32.vlgmr.msra.gmra.mrb[0].mxu0 %v270_v7 }
  0x6b   : > { %597 = vmatpush1.msra.mxu0 %v205_v5  ;;  %660 = vmatprep.mubr.f32.mxu0 %v1033_v0 }
  0x6e   : > { %357 = vmatmul.mubr.f32.vlgmr.msra.gmra.mrb[0].mxu1 %v270_v7 }
  0x6f   : > { %368 = vmatpush1.msra.mxu1 %v288_v8  ;;  %431 = vmatprep.mubr.f32.mxu1 %v1033_v0 }
  0x72   : > { %662 = vmatmul.mubr.f32.vlgmr.msra.gmra.mrb[0].mxu0 %v270_v7 }
  0x76   : > { %434 = vmatmul.mubr.f32.vlgmr.msra.gmra.mrb[0].mxu1 %v271_v10 }
 0x145   : > { %v663_v20 = vpop.f32.mrb[0].mxu0 }
 0x146   : > { %v665_v21 = vpop.f32.mrb[1].mxu0 }
 0x149   : > { %v435_v22 = vpop.f32.mrb[0].mxu1 }
 0x14a   : > { %v801_v23 = vadd.f32 %v663_v20, %v435_v22  ;;  %v437_v24 = vpop.f32.mrb[1].mxu1 }
 0x14b   : > { %v802_v25 = vadd.f32 %v665_v21, %v437_v24 }
 0x14c   : > { %668 = vst [vmem:[%s193_s19] sm:$0xff] %v801_v23 }
 0x14d   : > { %669 = vst [vmem:[%s193_s19 + $0x8] sm:$0xff] %v802_v25 }
 0x14e   : > { %956 = shalt.err (!%p953_p5)
}
 0x14f   : > { %s957_s24 = scalar_lea.hbm %s1221_s7, 256  ;;  %s961_s30 = scalar_lea.hbm %s1272_s2, 512 }
 0x150   : > { %p958_p10 = scmp.ne.s32.totalorder %s1221_s7, %s957_s24  ;;  %p962_p7 = scmp.lt.u32.totalorder %s1221_s7, %s1272_s2 }
 0x151   : > { %p963_p3 = scmp.lt.u32.totalorder %s961_s30, %s957_s24  ;;  %p965_p4 = scmp.lt.u32.totalorder %s957_s24, %s1221_s7 }
 0x152   : > { %p959_p1 = pnand %p958_p10, %p1151_p13 }
 0x153   : > { %p964_p11 = por %p963_p3, %p962_p7 }
 0x154   : > { %p960_p2 = pneg %p959_p1 }
 0x155   : > { %p966_p6 = por %p965_p4, %p964_p11 }
 0x157   : > { %p967_p8 = pnand %p966_p6, %p960_p2 }
 0x159   : > { %970 = shalt.err (!%p967_p8)
}
 0x15a   : > { %817 = dma.vmem_to_hbm [thread:$0]  (%p1151_p13), %s1223_s21, 256, %s1221_s7, %s671_s12  }
 0x15b PF: > { %s699_s6 = sand.u32 1, %s1009_s9   ;;  %p1291_p9 = scmp.ne.s32.totalorder %s1280_s20, 0 }
 0x15c   : > { %p1292_p12 = scmp.ge.s32.totalorder %s1029_s14, 2  ;;  %s700_s3 = scalar_lea.sflag [#allocation4], %s699_s6 }
 0x15e   : > { %p828_p0 = pnand %p1292_p12, %p1291_p9 }
 0x160   : > { %1004 = dma.done.wait (!%p828_p0), %s700_s3, 256  }
 0x161   : > { %1006 = vsyncadd (!%p828_p0), %s700_s3, 4294967040  ;;  %s19_s14 = sadd.s32 1, %s1029_s14   ;;  %s1293_s9 = smov %s1013_s10 }
 0x162   : > { %p16_p5 = scmp.ge.s32.totalorder %s19_s14, 4   ;;  %s1294_s10 = smov %s1017_s11 }
 0x163   : > { %s1295_s11 = smov %s1159_s28  ;;  %s1296_s12 = smov %s1025_s13 }
 0x164   : > { %s1297_s13 = smov %s1299_s25  ;;  %18 = sbr.rel (!%p16_p5) target bundleno = 7 (0x7), region = 79 }
 0x16b   :  { %705 = vsyncpa [#allocation3], 1 }
 0x16c   :  { %707 = vsyncpa [#allocation3 + $0x1], 1 }
 0x16d   :  { %708 = vsyncpa [#allocation6], 1 }
 0x16e   :  { %710 = vsyncpa [#allocation6 + $0x1], 1 }
 0x16f   :  { %711 = vsyncpa [#allocation4], 1 }
 0x170   :  { %713 = vsyncpa [#allocation4 + $0x1], 1 }

</bundles_post_ra>
